<compile_context>
chip_gen: v7x
topology: tpu7x:2x2x1
jax: 0.10.0
libtpu: 0.0.40
codegen_flags: <defaults>
</compile_context>

<pallas_src>
import jax
import jax.numpy as jnp
from jax.experimental import pallas as pl
from jax.experimental.pallas import tpu as pltpu

_LANE = 128
_SUBLANE = 8


def _round_up(v: int, m: int) -> int:
    return ((v + m - 1) // m) * m


# ---------------------------------------------------------------------------
# Kernels
# ---------------------------------------------------------------------------
def _ae_kernel_node_major(x_ref, e_ref, o_ref):
    # x_ref: (TN, E)  natural node-major tile (nodes on sublanes)
    # e_ref: (E, 1)   atomic energies column (f32), same block every step
    # o_ref: (1, TN)  per-node energies, lane-dense store
    x = x_ref[...].astype(jnp.float32)        # explicit f32 accumulation
    xt = jnp.transpose(x)                     # (E, TN): nodes -> lanes, once per tile (XLU)
    o_ref[...] = jnp.sum(xt * e_ref[...], axis=0, keepdims=True)


def _ae_kernel_elem_major(xt_ref, e_ref, o_ref):
    # xt_ref: (E, TN) element-major tile (nodes already on lanes) — no relayout needed
    xt = xt_ref[...].astype(jnp.float32)
    o_ref[...] = jnp.sum(xt * e_ref[...], axis=0, keepdims=True)


# ---------------------------------------------------------------------------
# Wrapper helpers
# ---------------------------------------------------------------------------
def _pick_tile(n: int, tile_cap: int) -> int:
    """Lane-aligned node tile; aims for >= 2 grid steps (v7x has 2 TensorCores)."""
    cap = max(_LANE, (int(tile_cap) // _LANE) * _LANE)
    half = _round_up(pl.cdiv(n, 2), _LANE)
    return max(_LANE, min(cap, half))


def _vmem_limit(in_block_bytes: int, e: int, tile: int) -> int:
    # double-buffered input + output blocks + in-kernel relayout temporaries + margin
    out_block = _SUBLANE * tile * 4
    f32_tile = _round_up(e, 2 * _SUBLANE) * tile * 4
    need = 3 * in_block_bytes + 2 * out_block + 3 * f32_tile + (8 << 20)
    return int(max(32 << 20, min(need, 100 << 20)))


def _launch(kernel, x_arr, x_block, x_index_map, n, e, tile, energies_f32, vmem_bytes):
    grid = pl.cdiv(n, tile)        # ragged last block: OOB data only feeds output cols >= n
    n_pad = grid * tile            # padded output row (output is only ~1/E of the traffic)
    e_col = energies_f32.reshape(e, 1)
    out = pl.pallas_call(
        kernel,
        out_shape=jax.ShapeDtypeStruct((1, n_pad), jnp.float32),
        grid_spec=pltpu.PrefetchScalarGridSpec(
            num_scalar_prefetch=0,
            grid=(grid,),
            in_specs=[
                pl.BlockSpec(x_block, x_index_map),
                pl.BlockSpec((e, 1), lambda i: (0, 0)),   # energies: constant block, fetched once
            ],
            out_specs=pl.BlockSpec((1, tile), lambda i: (0, i)),
        ),
        compiler_params=pltpu.CompilerParams(
            dimension_semantics=("parallel",),            # shards grid steps across TCs on v7x
            vmem_limit_bytes=vmem_bytes,
        ),
    )(x_arr, e_col)
    return out[0, :n]


# ---------------------------------------------------------------------------
# Public entry points
# ---------------------------------------------------------------------------
def atomic_energies_block(x: jax.Array, atomic_energies: jax.Array, *,
                          tile_nodes: int = 16384,
                          min_pallas_nodes: int = 2048) -> jax.Array:
    """AtomicEnergiesBlock.forward for x in its natural [N, E] layout.

    Node-major blocks lane-pad E -> 128 inside VMEM (~512 B/node for f32), so the
    default 16384-node tile keeps the two double-buffered input blocks at ~16 MiB
    plus a few MiB of relayout temporaries: inside v7x's 64 MiB VMEM with headroom
    and trivially inside v5e/v6e, while the ~0.65 MB moved per grid step dwarfs the
    ~0.35 us per-step overhead on every generation.
    """
    assert atomic_energies.ndim == 1 and x.ndim == 2
    n, e = x.shape
    assert atomic_energies.shape[0] == e
    energies_f32 = atomic_energies.astype(jnp.float32)
    if x.dtype == jnp.float64:      # TPU path is f32 (MACE default dtype is f32)
        x = x.astype(jnp.float32)

    if n < min_pallas_nodes:        # XLA's fused matvec is already at roofline here
        return x.astype(jnp.float32) @ energies_f32

    tile = _pick_tile(n, tile_nodes)
    in_block = tile * _LANE * x.dtype.itemsize        # (tile, E) block, E lane-padded to 128
    return _launch(_ae_kernel_node_major, x, (tile, e), lambda i: (i, 0),
                   n, e, tile, energies_f32, _vmem_limit(in_block, e, tile))


def atomic_energies_block_transposed(x_t: jax.Array, atomic_energies: jax.Array, *,
                                     tile_nodes: int = 65536,
                                     min_pallas_nodes: int = 2048) -> jax.Array:
    """Same op for x provided element-major ([E, N], nodes on the fast axis).

    Preferred when the caller can build the species weights already transposed
    (free for MACE one-hots): blocks are [E, tile] (E pads only to 16 sublanes,
    ~64 B/node), there is no in-kernel relayout, and the kernel streams at HBM
    roofline.  tile=65536 moves ~2.6 MB/step (>> 0.35 us step overhead on
    v5e/v6e/v7x) with ~8 MiB of double-buffered input VMEM.
    """
    assert atomic_energies.ndim == 1 and x_t.ndim == 2
    e, n = x_t.shape
    assert atomic_energies.shape[0] == e
    energies_f32 = atomic_energies.astype(jnp.float32)
    if x_t.dtype == jnp.float64:
        x_t = x_t.astype(jnp.float32)

    if n < min_pallas_nodes:
        return energies_f32 @ x_t.astype(jnp.float32)

    tile = _pick_tile(n, tile_nodes)
    in_block = _round_up(e, 2 * _SUBLANE) * tile * x_t.dtype.itemsize
    return _launch(_ae_kernel_elem_major, x_t, (e, tile), lambda i: (0, i),
                   n, e, tile, energies_f32, _vmem_limit(in_block, e, tile))


if __name__ == "__main__":
    key = jax.random.PRNGKey(0)
    k_e, k_x, k_xt, k_small = jax.random.split(key, 4)

    n_elements = 10
    atomic_energies = 100.0 * jax.random.normal(k_e, (n_elements,), dtype=jnp.float32)

    # 1) Natural [N, E] layout: 2-step grid with a ragged last block (no pad, no transpose).
    n_nodes = 2500
    x = jax.random.uniform(k_x, (n_nodes, n_elements), dtype=jnp.float32)
    out = jax.block_until_ready(atomic_energies_block(x, atomic_energies))
    ref = x @ atomic_energies
    assert out.shape == (n_nodes,)
    assert jnp.allclose(out, ref, atol=1e-3, rtol=1e-5)

    # 2) Element-major [E, N] layout (upstream-provided): roofline kernel path.
    x_t = jax.random.uniform(k_xt, (n_elements, n_nodes), dtype=jnp.float32)
    out_t = jax.block_until_ready(
        atomic_energies_block_transposed(x_t, atomic_energies))
    ref_t = atomic_energies @ x_t
    assert out_t.shape == (n_nodes,)
    assert jnp.allclose(out_t, ref_t, atol=1e-3, rtol=1e-5)

    # 3) Tiny graph: XLA fallback (crossover threshold raised per review).
    x_small = jax.random.uniform(k_small, (100, n_elements), dtype=jnp.float32)
    out_small = jax.block_until_ready(atomic_energies_block(x_small, atomic_energies))
    assert out_small.shape == (100,)
    assert jnp.allclose(out_small, x_small @ atomic_energies, atol=1e-3, rtol=1e-5)

    print("KERNEL_OK")
</pallas_src>

<mosaic_0001>
module attributes {stable_mosaic.version = 11 : i64} {
  func.func @_ae_kernel_node_major(%arg0: i32, %arg1: memref<1280x10xf32, #tpu.memory_space<vmem>>, %arg2: memref<10x1xf32, #tpu.memory_space<vmem>>, %arg3: memref<1x1280xf32, #tpu.memory_space<vmem>>) attributes {dimension_semantics = [#tpu.dimension_semantics<parallel>], iteration_bounds = array<i64: 2>, scalar_prefetch = 0 : i64, scratch_operands = 0 : i64, tpu.core_type = #tpu.core_type<tc>, window_params = [{transform_indices = @transform_0, window_bounds = array<i64: 1280, 10>}, {pipeline_mode = #tpu.pipeline_mode<synchronous>, transform_indices = @transform_1, window_bounds = array<i64: 10, 1>}, {transform_indices = @transform_2, window_bounds = array<i64: 1, 1280>}]} {
    %c0 = arith.constant 0 : index
    %c0_0 = arith.constant 0 : index
    %0 = vector.load %arg1[%c0, %c0_0] : memref<1280x10xf32, #tpu.memory_space<vmem>>, vector<1280x10xf32>
    %1 = tpu.transpose %0, [1, 0] : vector<1280x10xf32> -> vector<10x1280xf32>
    %c0_1 = arith.constant 0 : index
    %c0_2 = arith.constant 0 : index
    %2 = vector.load %arg2[%c0_1, %c0_2] : memref<10x1xf32, #tpu.memory_space<vmem>>, vector<10x1xf32>
    %3 = vector.broadcast %2 : vector<10x1xf32> to vector<10x1280xf32>
    %4 = arith.mulf %1, %3 : vector<10x1280xf32>
    %cst = arith.constant dense<0.000000e+00> : vector<1280xf32>
    %5 = vector.multi_reduction <add>, %4, %cst [0] : vector<10x1280xf32> to vector<1280xf32>
    %6 = vector.shape_cast %5 : vector<1280xf32> to vector<1x1280xf32>
    %c0_3 = arith.constant 0 : index
    %c0_4 = arith.constant 0 : index
    %7 = vector.load %arg3[%c0_3, %c0_4] : memref<1x1280xf32, #tpu.memory_space<vmem>>, vector<1x1280xf32>
    tpu.vector_store %arg3[%c0_3, %c0_4], %6 {strides = array<i32>} : memref<1x1280xf32, #tpu.memory_space<vmem>>, vector<1x1280xf32>,
    return
  }
  func.func @transform_0(%arg0: i32) -> (i32, i32) {
    %c0_i32 = arith.constant 0 : i32
    %c0_i32_0 = arith.constant 0 : i32
    return %arg0, %c0_i32 : i32, i32
  }
  func.func @transform_1(%arg0: i32) -> (i32, i32) {
    %c0_i32 = arith.constant 0 : i32
    %c0_i32_0 = arith.constant 0 : i32
    %c0_i32_1 = arith.constant 0 : i32
    return %c0_i32, %c0_i32_0 : i32, i32
  }
  func.func @transform_2(%arg0: i32) -> (i32, i32) {
    %c0_i32 = arith.constant 0 : i32
    %c0_i32_0 = arith.constant 0 : i32
    return %c0_i32, %arg0 : i32, i32
  }
}

</mosaic_0001>

<bundles_post_ra>
// kernel: tpu_custom_call.1
= control target key start
LH: loop header
LB: loop body
LE: loop exit
PB: predicated region body
PF: predicated region fallthrough
CT: control target
= control target key end

     0   :  { %7 = vsyncpa [#allocation3], 0  ;;  %s1361_s0 = inlined_call_operand.vmem [shape: f32[2500,10], index: 0, kind: input, shape index: {}]   ;;  %s1362_s1 = inlined_call_operand.vmem [shape: f32[10,1], index: 1, kind: input, shape index: {}]   ;;  %s1363_s2 = inlined_call_operand.hbm [shape: f32[1,2560], index: 2, kind: output, shape index: {}]  }
   0x1   :  { %9 = vsyncpa [#allocation3 + $0x1], 0  ;;  %s1049_s9 = smov 0   ;;  %s1051_s10 = smov 0  }
   0x2   :  { %s1053_s11 = smov 0   ;;  %s1055_s12 = smov 0  }
   0x3 LB: > { %s913_s13 = sadd.s32 4294967295, %s1029_s12   ;;  %s914_s14 = sadd.s32 4294967294, %s1029_s12   ;;  %s1029_s12 = sphi %s1055_s12, %s1369_s12   ;;  %s1025_s11 = sphi %s1053_s11, %s1368_s11   ;;  %s1021_s10 = sphi %s1051_s10, %s1367_s10   ;;  %s1017_s9 = sphi %s1049_s9, %s1366_s9  }
   0x4   : > { %s1072_s15 = sadd.s32 1, %s1029_s12   ;;  %s69_s16 = sadd.s32 1, %s1025_s11 }
   0x5   : > { %s66_s17 = ssub.s32 %s1029_s12, %s1072_s15  ;;  %p79_p0 = scmp.ne.s32.totalorder %s1025_s11, %s1021_s10 }
   0x6   : > { %p67_p1 = scmp.eq.s32.totalorder %s66_s17, 0  ;;  %p80_p2 = scmp.eq.s32.totalorder %s913_s13, 1 }
   0x7   : > { %p85_p3 = scmp.ne.s32.totalorder %s1021_s10, %s1017_s9  ;;  %p86_p4 = scmp.eq.s32.totalorder %s914_s14, 1 }
   0x8   : > { %s1082_s18 = scalar_select %p67_p1, %s1025_s11, %s69_s16  }
   0x9   : > { %p1084_p5 = por %p80_p2, %p79_p0  ;;  %p1088_p6 = por %p86_p4, %p85_p3 }
   0xa   : > { %p917_p7 = scmp.ge.s32.totalorder %s1029_s12, 1  ;;  %p124_p8 = scmp.lt.s32.totalorder %s1029_s12, 3 }
   0xc   : > { %p125_p9 = pnand %p917_p7, %p124_p8 }
   0xd   : > { %v646_v0 = vld [vmem:[%s1362_s1 + $0x8] sm:$0x3] (!%p125_p9)  ;;  %v645_v1 = vld [vmem:[%s1362_s1] sm:$0xff] (!%p125_p9)  ;;  %v1031_v2 = vmov (!%p125_p9), 0   ;;  %s1100_s25 = smul.u32 (!%p125_p9), 160, %s913_s13  ;;  %vm677_vm0 = vcmask (!%p125_p9), 1041408  }
   0xe   : > { %128 = sbr.rel (%p125_p9) target bundleno = 482 (0x1e2), region = 28  ;;  %966 = vset.pattern.permute.xlu1 (!%p125_p9), %v1031_v2  ;;  %965 = vset.pattern.permute.xlu0 (!%p125_p9), %v1031_v2  ;;  %s147_s3 = sand.u32 (!%p125_p9), 1, %s1021_s10  }
   0xf   : > { %654 = vperm.xlu0 (!%p125_p9), %965, %v646_v0   ;;  %649 = vperm.xlu1 (!%p125_p9), %966, %v645_v1   ;;  %p155_p10 = scmp.lt.s32.totalorder (!%p125_p9), %s1100_s25, 312  ;;  %s923_s4 = smul.u32 (!%p125_p9), 10, %s147_s3 }
  0x10   : > { %s1316_s13 = scalar_lea.hbm (!%p125_p9), %s1363_s2, %s1100_s25  ;;  %s841_s14 = scalar_lea.sflag (!%p125_p9), [#allocation3], %s147_s3 }
  0x11   : > { %s1301_s5 = scalar_lea.vmem (!%p125_p9), [#allocation2], %s923_s4  ;;  %s1033_s17 = smov (!%p125_p9), [#allocation2]  }
  0x12   : > { %s855_s6 = sshll.u32 (!%p125_p9), %s1301_s5, 4  ;;  %s971_s21 = sshll.u32 (!%p125_p9), %s1033_s17, 4  ;;  %s1318_s6 = int_to_ptr.vmem [resolvable:$true] %s855_s6  ;;  %s972_s21 = int_to_ptr.vmem [resolvable:$false] %s971_s21 }
  0x13   : > { %s967_s16 = scalar_lea.vmem (!%p125_p9), %s1318_s6, 160  ;;  %s973_s22 = scalar_lea.vmem (!%p125_p9), %s972_s21, 320 }
  0x14   : > { %p968_p11 = scmp.ne.s32.totalorder (!%p125_p9), %s1318_s6, %s967_s16  ;;  %p974_p0 = scmp.lt.s32.totalorder (!%p125_p9), %s1318_s6, %s972_s21 }
  0x15   : > { %s156_s26 = scalar_select %p155_p10, %s1100_s25, 312 }
  0x16   : > { %p969_p12 = pnand %p968_p11, %p1084_p5  ;;  %p975_p1 = scmp.lt.s32.totalorder %s973_s22, %s967_s16 }
  0x17   : > { %s918_s27 = sshll.u32 %s156_s26, 3 }
  0x18   : > { %s1107_s30 = scalar_lea.vmem %s1361_s0, %s918_s27  ;;  %p970_p13 = pneg %p969_p12 }
  0x19   : > { %v165_v3 = vld [vmem:[%s1107_s30] sm:$0xff]  ;;  %v166_v4 = vld [vmem:[%s1107_s30 + $0x8] sm:$0xff]  ;;  %v167_v5 = vld [vmem:[%s1107_s30 + $0x10] sm:$0xff]  ;;  %p976_p2 = por %p975_p1, %p974_p0 }
  0x1a   : > { %v181_v6 = vld [vmem:[%s1107_s30 + $0x80] sm:$0xff]  ;;  %v168_v7 = vld [vmem:[%s1107_s30 + $0x18] sm:$0xff]  ;;  %v182_v8 = vld [vmem:[%s1107_s30 + $0x88] sm:$0xff] }
  0x1b   : > { %v169_v9 = vld [vmem:[%s1107_s30 + $0x20] sm:$0xff]  ;;  %v183_v10 = vld [vmem:[%s1107_s30 + $0x90] sm:$0xff]  ;;  %v170_v11 = vld [vmem:[%s1107_s30 + $0x28] sm:$0xff]  ;;  %p977_p3 = pnand %p976_p2, %p970_p13 }
  0x1c   : > { %v184_v12 = vld [vmem:[%s1107_s30 + $0x98] sm:$0xff]  ;;  %v171_v13 = vld [vmem:[%s1107_s30 + $0x30] sm:$0xff]  ;;  %v185_v14 = vld [vmem:[%s1107_s30 + $0xa0] sm:$0xff] }
  0x1d   : > { %v172_v15 = vld [vmem:[%s1107_s30 + $0x38] sm:$0xff]  ;;  %v186_v16 = vld [vmem:[%s1107_s30 + $0xa8] sm:$0xff]  ;;  %v173_v17 = vld [vmem:[%s1107_s30 + $0x40] sm:$0xff] }
  0x1e   : > { %v187_v18 = vld [vmem:[%s1107_s30 + $0xb0] sm:$0xff]  ;;  %v174_v19 = vld [vmem:[%s1107_s30 + $0x48] sm:$0xff]  ;;  %v188_v20 = vld [vmem:[%s1107_s30 + $0xb8] sm:$0xff] }
  0x1f   : > { %v175_v21 = vld [vmem:[%s1107_s30 + $0x50] sm:$0xff]  ;;  %v189_v22 = vld [vmem:[%s1107_s30 + $0xc0] sm:$0xff]  ;;  %v176_v23 = vld [vmem:[%s1107_s30 + $0x58] sm:$0xff] }
  0x20   : > { %v190_v24 = vld [vmem:[%s1107_s30 + $0xc8] sm:$0xff]  ;;  %v177_v25 = vld [vmem:[%s1107_s30 + $0x60] sm:$0xff]  ;;  %v191_v26 = vld [vmem:[%s1107_s30 + $0xd0] sm:$0xff] }
  0x21   : > { %v178_v27 = vld [vmem:[%s1107_s30 + $0x68] sm:$0xff]  ;;  %v192_v28 = vld [vmem:[%s1107_s30 + $0xd8] sm:$0xff]  ;;  %v179_v29 = vld [vmem:[%s1107_s30 + $0x70] sm:$0xff] }
  0x22   : > { %v193_v30 = vld [vmem:[%s1107_s30 + $0xe0] sm:$0xff]  ;;  %v180_v31 = vld [vmem:[%s1107_s30 + $0x78] sm:$0xff]  ;;  %v194_v32 = vld [vmem:[%s1107_s30 + $0xe8] sm:$0xff] }
  0x23   : > { %v197_v33 = vld [vmem:[%s1107_s30 + $0x100] sm:$0xff]  ;;  %v195_v34 = vld [vmem:[%s1107_s30 + $0xf0] sm:$0xff]  ;;  %v198_v35 = vld [vmem:[%s1107_s30 + $0x108] sm:$0xff] }
  0x24   : > { %v196_v36 = vld [vmem:[%s1107_s30 + $0xf8] sm:$0xff]  ;;  %v199_v37 = vld [vmem:[%s1107_s30 + $0x110] sm:$0xff]  ;;  %v213_v38 = vld [vmem:[%s1107_s30 + $0x180] sm:$0xff] }
  0x25   : > { %v200_v39 = vld [vmem:[%s1107_s30 + $0x118] sm:$0xff]  ;;  %v214_v40 = vld [vmem:[%s1107_s30 + $0x188] sm:$0xff]  ;;  %v201_v41 = vld [vmem:[%s1107_s30 + $0x120] sm:$0xff] }
  0x26   : > { %v215_v42 = vld [vmem:[%s1107_s30 + $0x190] sm:$0xff]  ;;  %v202_v43 = vld [vmem:[%s1107_s30 + $0x128] sm:$0xff]  ;;  %v216_v44 = vld [vmem:[%s1107_s30 + $0x198] sm:$0xff] }
  0x27   : > { %v203_v45 = vld [vmem:[%s1107_s30 + $0x130] sm:$0xff]  ;;  %v217_v46 = vld [vmem:[%s1107_s30 + $0x1a0] sm:$0xff]  ;;  %v204_v47 = vld [vmem:[%s1107_s30 + $0x138] sm:$0xff] }
  0x28   : > { %v218_v48 = vld [vmem:[%s1107_s30 + $0x1a8] sm:$0xff]  ;;  %v205_v49 = vld [vmem:[%s1107_s30 + $0x140] sm:$0xff]  ;;  %v219_v50 = vld [vmem:[%s1107_s30 + $0x1b0] sm:$0xff] }
  0x29   : > { %v206_v51 = vld [vmem:[%s1107_s30 + $0x148] sm:$0xff]  ;;  %v220_v52 = vld [vmem:[%s1107_s30 + $0x1b8] sm:$0xff]  ;;  %v207_v53 = vld [vmem:[%s1107_s30 + $0x150] sm:$0xff] }
  0x2a   : > { %v221_v54 = vld [vmem:[%s1107_s30 + $0x1c0] sm:$0xff]  ;;  %v208_v55 = vld [vmem:[%s1107_s30 + $0x158] sm:$0xff]  ;;  %v222_v56 = vld [vmem:[%s1107_s30 + $0x1c8] sm:$0xff] }
  0x2b   : > { %v209_v57 = vld [vmem:[%s1107_s30 + $0x160] sm:$0xff]  ;;  %v223_v58 = vld [vmem:[%s1107_s30 + $0x1d0] sm:$0xff]  ;;  %v210_v59 = vld [vmem:[%s1107_s30 + $0x168] sm:$0xff] }
  0x2c   : > { %v224_v60 = vld [vmem:[%s1107_s30 + $0x1d8] sm:$0xff]  ;;  %v211_v61 = vld [vmem:[%s1107_s30 + $0x170] sm:$0xff]  ;;  %v225_v62 = vld [vmem:[%s1107_s30 + $0x1e0] sm:$0xff] }
  0x2d   : > { %325 = vxpose.xlu0.b32.start [1/16] (narrow) %v165_v3, 16  ;;  %v212_v63 = vld [vmem:[%s1107_s30 + $0x178] sm:$0xff]  ;;  %v226_v0 = vld [vmem:[%s1107_s30 + $0x1e8] sm:$0xff]  ;;  %v229_v1 = vld [vmem:[%s1107_s30 + $0x200] sm:$0xff] }
  0x2e   : > { %v227_v2 = vld [vmem:[%s1107_s30 + $0x1f0] sm:$0xff]  ;;  %v230_v3 = vld [vmem:[%s1107_s30 + $0x208] sm:$0xff] }
  0x31   : > { %326 = vxpose.xlu0.b32.cont [2/16] (narrow) %v166_v4, 16  ;;  %v228_v4 = vld [vmem:[%s1107_s30 + $0x1f8] sm:$0xff] }
  0x35   : > { %327 = vxpose.xlu0.b32.cont [3/16] (narrow) %v167_v5, 16  ;;  %v231_v5 = vld [vmem:[%s1107_s30 + $0x210] sm:$0xff] }
  0x38   : > { %357 = vxpose.xlu1.b32.start [1/16] (narrow) %v181_v6, 16  ;;  %v245_v6 = vld [vmem:[%s1107_s30 + $0x280] sm:$0xff] }
  0x39   : > { %328 = vxpose.xlu0.b32.cont [4/16] (narrow) %v168_v7, 16  ;;  %v232_v7 = vld [vmem:[%s1107_s30 + $0x218] sm:$0xff] }
  0x3c   : > { %358 = vxpose.xlu1.b32.cont [2/16] (narrow) %v182_v8, 16  ;;  %v246_v8 = vld [vmem:[%s1107_s30 + $0x288] sm:$0xff] }
  0x3d   : > { %329 = vxpose.xlu0.b32.cont [5/16] (narrow) %v169_v9, 16  ;;  %v233_v9 = vld [vmem:[%s1107_s30 + $0x220] sm:$0xff] }
  0x40   : > { %359 = vxpose.xlu1.b32.cont [3/16] (narrow) %v183_v10, 16  ;;  %v247_v10 = vld [vmem:[%s1107_s30 + $0x290] sm:$0xff] }
  0x41   : > { %330 = vxpose.xlu0.b32.cont [6/16] (narrow) %v170_v11, 16  ;;  %v234_v11 = vld [vmem:[%s1107_s30 + $0x228] sm:$0xff] }
  0x44   : > { %360 = vxpose.xlu1.b32.cont [4/16] (narrow) %v184_v12, 16  ;;  %v248_v12 = vld [vmem:[%s1107_s30 + $0x298] sm:$0xff] }
  0x45   : > { %331 = vxpose.xlu0.b32.cont [7/16] (narrow) %v171_v13, 16  ;;  %v235_v13 = vld [vmem:[%s1107_s30 + $0x230] sm:$0xff] }
  0x48   : > { %361 = vxpose.xlu1.b32.cont [5/16] (narrow) %v185_v14, 16  ;;  %v249_v14 = vld [vmem:[%s1107_s30 + $0x2a0] sm:$0xff] }
  0x49   : > { %332 = vxpose.xlu0.b32.cont [8/16] (narrow) %v172_v15, 16  ;;  %v236_v15 = vld [vmem:[%s1107_s30 + $0x238] sm:$0xff] }
  0x4c   : > { %362 = vxpose.xlu1.b32.cont [6/16] (narrow) %v186_v16, 16  ;;  %v250_v16 = vld [vmem:[%s1107_s30 + $0x2a8] sm:$0xff] }
  0x4d   : > { %333 = vxpose.xlu0.b32.cont [9/16] (narrow) %v173_v17, 16  ;;  %v237_v17 = vld [vmem:[%s1107_s30 + $0x240] sm:$0xff] }
  0x50   : > { %363 = vxpose.xlu1.b32.cont [7/16] (narrow) %v187_v18, 16  ;;  %v251_v18 = vld [vmem:[%s1107_s30 + $0x2b0] sm:$0xff] }
  0x51   : > { %334 = vxpose.xlu0.b32.cont [10/16] (narrow) %v174_v19, 16  ;;  %v238_v19 = vld [vmem:[%s1107_s30 + $0x248] sm:$0xff] }
  0x54   : > { %364 = vxpose.xlu1.b32.cont [8/16] (narrow) %v188_v20, 16  ;;  %v252_v20 = vld [vmem:[%s1107_s30 + $0x2b8] sm:$0xff] }
  0x55   : > { %335 = vxpose.xlu0.b32.cont [11/16] (narrow) %v175_v21, 16  ;;  %v239_v21 = vld [vmem:[%s1107_s30 + $0x250] sm:$0xff] }
  0x58   : > { %365 = vxpose.xlu1.b32.cont [9/16] (narrow) %v189_v22, 16  ;;  %v253_v22 = vld [vmem:[%s1107_s30 + $0x2c0] sm:$0xff] }
  0x59   : > { %336 = vxpose.xlu0.b32.cont [12/16] (narrow) %v176_v23, 16  ;;  %v240_v23 = vld [vmem:[%s1107_s30 + $0x258] sm:$0xff] }
  0x5c   : > { %366 = vxpose.xlu1.b32.cont [10/16] (narrow) %v190_v24, 16  ;;  %v254_v24 = vld [vmem:[%s1107_s30 + $0x2c8] sm:$0xff] }
  0x5d   : > { %337 = vxpose.xlu0.b32.cont [13/16] (narrow) %v177_v25, 16  ;;  %v241_v25 = vld [vmem:[%s1107_s30 + $0x260] sm:$0xff] }
  0x60   : > { %367 = vxpose.xlu1.b32.cont [11/16] (narrow) %v191_v26, 16  ;;  %v255_v26 = vld [vmem:[%s1107_s30 + $0x2d0] sm:$0xff] }
  0x61   : > { %338 = vxpose.xlu0.b32.cont [14/16] (narrow) %v178_v27, 16  ;;  %v242_v27 = vld [vmem:[%s1107_s30 + $0x268] sm:$0xff] }
  0x64   : > { %368 = vxpose.xlu1.b32.cont [12/16] (narrow) %v192_v28, 16  ;;  %v256_v28 = vld [vmem:[%s1107_s30 + $0x2d8] sm:$0xff] }
  0x65   : > { %339 = vxpose.xlu0.b32.cont [15/16] (narrow) %v179_v29, 16  ;;  %v243_v29 = vld [vmem:[%s1107_s30 + $0x270] sm:$0xff] }
  0x68   : > { %369 = vxpose.xlu1.b32.cont [13/16] (narrow) %v193_v30, 16  ;;  %v257_v30 = vld [vmem:[%s1107_s30 + $0x2e0] sm:$0xff] }
  0x69   : > { %340 = vxpose.xlu0.b32.end [16/16] (narrow) %v180_v31, 16  ;;  %v244_v31 = vld [vmem:[%s1107_s30 + $0x278] sm:$0xff] }
  0x6c   : > { %370 = vxpose.xlu1.b32.cont [14/16] (narrow) %v194_v32, 16  ;;  %v258_v32 = vld [vmem:[%s1107_s30 + $0x2e8] sm:$0xff] }
  0x6d   : > { %389 = vxpose.xlu0.b32.start [1/16] (narrow) %v197_v33, 16  ;;  %v261_v33 = vld [vmem:[%s1107_s30 + $0x300] sm:$0xff] }
  0x70   : > { %371 = vxpose.xlu1.b32.cont [15/16] (narrow) %v195_v34, 16  ;;  %v259_v34 = vld [vmem:[%s1107_s30 + $0x2f0] sm:$0xff] }
  0x71   : > { %390 = vxpose.xlu0.b32.cont [2/16] (narrow) %v198_v35, 16  ;;  %v262_v35 = vld [vmem:[%s1107_s30 + $0x308] sm:$0xff] }
  0x74   : > { %372 = vxpose.xlu1.b32.end [16/16] (narrow) %v196_v36, 16  ;;  %v260_v36 = vld [vmem:[%s1107_s30 + $0x2f8] sm:$0xff] }
  0x75   : > { %391 = vxpose.xlu0.b32.cont [3/16] (narrow) %v199_v37, 16  ;;  %v263_v37 = vld [vmem:[%s1107_s30 + $0x310] sm:$0xff] }
  0x78   : > { %421 = vxpose.xlu1.b32.start [1/16] (narrow) %v213_v38, 16  ;;  %v277_v38 = vld [vmem:[%s1107_s30 + $0x380] sm:$0xff] }
  0x79   : > { %392 = vxpose.xlu0.b32.cont [4/16] (narrow) %v200_v39, 16  ;;  %v264_v39 = vld [vmem:[%s1107_s30 + $0x318] sm:$0xff] }
  0x7c   : > { %422 = vxpose.xlu1.b32.cont [2/16] (narrow) %v214_v40, 16  ;;  %v278_v40 = vld [vmem:[%s1107_s30 + $0x388] sm:$0xff] }
  0x7d   : > { %393 = vxpose.xlu0.b32.cont [5/16] (narrow) %v201_v41, 16  ;;  %v265_v41 = vld [vmem:[%s1107_s30 + $0x320] sm:$0xff] }
  0x80   : > { %423 = vxpose.xlu1.b32.cont [3/16] (narrow) %v215_v42, 16  ;;  %v279_v42 = vld [vmem:[%s1107_s30 + $0x390] sm:$0xff] }
  0x81   : > { %394 = vxpose.xlu0.b32.cont [6/16] (narrow) %v202_v43, 16  ;;  %v266_v43 = vld [vmem:[%s1107_s30 + $0x328] sm:$0xff] }
  0x84   : > { %424 = vxpose.xlu1.b32.cont [4/16] (narrow) %v216_v44, 16  ;;  %v280_v44 = vld [vmem:[%s1107_s30 + $0x398] sm:$0xff] }
  0x85   : > { %395 = vxpose.xlu0.b32.cont [7/16] (narrow) %v203_v45, 16  ;;  %v267_v45 = vld [vmem:[%s1107_s30 + $0x330] sm:$0xff] }
  0x88   : > { %425 = vxpose.xlu1.b32.cont [5/16] (narrow) %v217_v46, 16  ;;  %v281_v46 = vld [vmem:[%s1107_s30 + $0x3a0] sm:$0xff] }
  0x89   : > { %396 = vxpose.xlu0.b32.cont [8/16] (narrow) %v204_v47, 16  ;;  %v268_v47 = vld [vmem:[%s1107_s30 + $0x338] sm:$0xff] }
  0x8c   : > { %426 = vxpose.xlu1.b32.cont [6/16] (narrow) %v218_v48, 16  ;;  %v282_v48 = vld [vmem:[%s1107_s30 + $0x3a8] sm:$0xff] }
  0x8d   : > { %397 = vxpose.xlu0.b32.cont [9/16] (narrow) %v205_v49, 16  ;;  %v269_v49 = vld [vmem:[%s1107_s30 + $0x340] sm:$0xff] }
  0x90   : > { %427 = vxpose.xlu1.b32.cont [7/16] (narrow) %v219_v50, 16  ;;  %v283_v50 = vld [vmem:[%s1107_s30 + $0x3b0] sm:$0xff] }
  0x91   : > { %398 = vxpose.xlu0.b32.cont [10/16] (narrow) %v206_v51, 16  ;;  %v270_v51 = vld [vmem:[%s1107_s30 + $0x348] sm:$0xff] }
  0x94   : > { %428 = vxpose.xlu1.b32.cont [8/16] (narrow) %v220_v52, 16  ;;  %v284_v52 = vld [vmem:[%s1107_s30 + $0x3b8] sm:$0xff] }
  0x95   : > { %399 = vxpose.xlu0.b32.cont [11/16] (narrow) %v207_v53, 16  ;;  %v271_v53 = vld [vmem:[%s1107_s30 + $0x350] sm:$0xff] }
  0x98   : > { %429 = vxpose.xlu1.b32.cont [9/16] (narrow) %v221_v54, 16  ;;  %v285_v54 = vld [vmem:[%s1107_s30 + $0x3c0] sm:$0xff] }
  0x99   : > { %400 = vxpose.xlu0.b32.cont [12/16] (narrow) %v208_v55, 16  ;;  %v272_v55 = vld [vmem:[%s1107_s30 + $0x358] sm:$0xff] }
  0x9c   : > { %430 = vxpose.xlu1.b32.cont [10/16] (narrow) %v222_v56, 16  ;;  %v286_v56 = vld [vmem:[%s1107_s30 + $0x3c8] sm:$0xff] }
  0x9d   : > { %401 = vxpose.xlu0.b32.cont [13/16] (narrow) %v209_v57, 16  ;;  %v273_v57 = vld [vmem:[%s1107_s30 + $0x360] sm:$0xff] }
  0xa0   : > { %431 = vxpose.xlu1.b32.cont [11/16] (narrow) %v223_v58, 16  ;;  %v287_v58 = vld [vmem:[%s1107_s30 + $0x3d0] sm:$0xff] }
  0xa1   : > { %402 = vxpose.xlu0.b32.cont [14/16] (narrow) %v210_v59, 16  ;;  %v274_v59 = vld [vmem:[%s1107_s30 + $0x368] sm:$0xff] }
  0xa4   : > { %432 = vxpose.xlu1.b32.cont [12/16] (narrow) %v224_v60, 16  ;;  %v288_v60 = vld [vmem:[%s1107_s30 + $0x3d8] sm:$0xff] }
  0xa5   : > { %403 = vxpose.xlu0.b32.cont [15/16] (narrow) %v211_v61, 16  ;;  %v275_v61 = vld [vmem:[%s1107_s30 + $0x370] sm:$0xff] }
  0xa8   : > { %433 = vxpose.xlu1.b32.cont [13/16] (narrow) %v225_v62, 16  ;;  %v289_v62 = vld [vmem:[%s1107_s30 + $0x3e0] sm:$0xff] }
  0xa9   : > { %404 = vxpose.xlu0.b32.end [16/16] (narrow) %v212_v63, 16  ;;  %v276_v63 = vld [vmem:[%s1107_s30 + $0x378] sm:$0xff] }
  0xac   : > { %434 = vxpose.xlu1.b32.cont [14/16] (narrow) %v226_v0, 16  ;;  %v290_v0 = vld [vmem:[%s1107_s30 + $0x3e8] sm:$0xff] }
  0xad   : > { %453 = vxpose.xlu0.b32.start [1/16] (narrow) %v229_v1, 16  ;;  %v309_v1 = vld [vmem:[%s1107_s30 + $0x480] sm:$0xff] }
  0xb0   : > { %435 = vxpose.xlu1.b32.cont [15/16] (narrow) %v227_v2, 16  ;;  %v291_v2 = vld [vmem:[%s1107_s30 + $0x3f0] sm:$0xff] }
  0xb1   : > { %454 = vxpose.xlu0.b32.cont [2/16] (narrow) %v230_v3, 16  ;;  %v310_v3 = vld [vmem:[%s1107_s30 + $0x488] sm:$0xff] }
  0xb4   : > { %436 = vxpose.xlu1.b32.end [16/16] (narrow) %v228_v4, 16  ;;  %v292_v4 = vld [vmem:[%s1107_s30 + $0x3f8] sm:$0xff] }
  0xb5   : > { %455 = vxpose.xlu0.b32.cont [3/16] (narrow) %v231_v5, 16  ;;  %v311_v5 = vld [vmem:[%s1107_s30 + $0x490] sm:$0xff] }
  0xb8   : > { %485 = vxpose.xlu1.b32.start [1/16] (narrow) %v245_v6, 16  ;;  %v293_v6 = vld [vmem:[%s1107_s30 + $0x400] sm:$0xff] }
  0xb9   : > { %456 = vxpose.xlu0.b32.cont [4/16] (narrow) %v232_v7, 16  ;;  %v312_v7 = vld [vmem:[%s1107_s30 + $0x498] sm:$0xff] }
  0xbc   : > { %486 = vxpose.xlu1.b32.cont [2/16] (narrow) %v246_v8, 16  ;;  %v294_v8 = vld [vmem:[%s1107_s30 + $0x408] sm:$0xff] }
  0xbd   : > { %457 = vxpose.xlu0.b32.cont [5/16] (narrow) %v233_v9, 16  ;;  %v313_v9 = vld [vmem:[%s1107_s30 + $0x4a0] sm:$0xff] }
  0xc0   : > { %487 = vxpose.xlu1.b32.cont [3/16] (narrow) %v247_v10, 16  ;;  %v295_v10 = vld [vmem:[%s1107_s30 + $0x410] sm:$0xff] }
  0xc1   : > { %458 = vxpose.xlu0.b32.cont [6/16] (narrow) %v234_v11, 16  ;;  %v314_v11 = vld [vmem:[%s1107_s30 + $0x4a8] sm:$0xff] }
  0xc4   : > { %488 = vxpose.xlu1.b32.cont [4/16] (narrow) %v248_v12, 16  ;;  %v296_v12 = vld [vmem:[%s1107_s30 + $0x418] sm:$0xff] }
  0xc5   : > { %459 = vxpose.xlu0.b32.cont [7/16] (narrow) %v235_v13, 16  ;;  %v315_v13 = vld [vmem:[%s1107_s30 + $0x4b0] sm:$0xff] }
  0xc8   : > { %489 = vxpose.xlu1.b32.cont [5/16] (narrow) %v249_v14, 16  ;;  %v297_v14 = vld [vmem:[%s1107_s30 + $0x420] sm:$0xff] }
  0xc9   : > { %460 = vxpose.xlu0.b32.cont [8/16] (narrow) %v236_v15, 16  ;;  %v316_v15 = vld [vmem:[%s1107_s30 + $0x4b8] sm:$0xff] }
  0xcc   : > { %490 = vxpose.xlu1.b32.cont [6/16] (narrow) %v250_v16, 16  ;;  %v1250_v16 = vpop.permute.xlu1 %649 }
  0xcd   : > { %461 = vxpose.xlu0.b32.cont [9/16] (narrow) %v237_v17, 16  ;;  %v298_v17 = vld [vmem:[%s1107_s30 + $0x428] sm:$0xff] }
  0xd0   : > { %491 = vxpose.xlu1.b32.cont [7/16] (narrow) %v251_v18, 16  ;;  %v1253_v18 = vpop.permute.xlu0 %654 }
  0xd1   : > { %462 = vxpose.xlu0.b32.cont [10/16] (narrow) %v238_v19, 16  ;;  %v317_v19 = vld [vmem:[%s1107_s30 + $0x4c0] sm:$0xff] }
  0xd4   : > { %492 = vxpose.xlu1.b32.cont [8/16] (narrow) %v252_v20, 16  ;;  %v373_v20 = vpop.trf.xlu1 }
  0xd5   : > { %463 = vxpose.xlu0.b32.cont [11/16] (narrow) %v239_v21, 16  ;;  %v299_v21 = vld [vmem:[%s1107_s30 + $0x430] sm:$0xff] }
  0xd8   : > { %493 = vxpose.xlu1.b32.cont [9/16] (narrow) %v253_v22, 16  ;;  %v341_v22 = vpop.trf.xlu0 }
  0xd9   : > { %464 = vxpose.xlu0.b32.cont [12/16] (narrow) %v240_v23, 16  ;;  %v318_v23 = vld [vmem:[%s1107_s30 + $0x4c8] sm:$0xff] }
  0xdc   : > { %494 = vxpose.xlu1.b32.cont [10/16] (narrow) %v254_v24, 16  ;;  %v300_v24 = vld [vmem:[%s1107_s30 + $0x438] sm:$0xff] }
  0xdd   : > { %465 = vxpose.xlu0.b32.cont [13/16] (narrow) %v241_v25, 16  ;;  %v374_v25 = vpop.trf.xlu1 }
  0xe0   : > { %495 = vxpose.xlu1.b32.cont [11/16] (narrow) %v255_v26, 16  ;;  %v319_v26 = vld [vmem:[%s1107_s30 + $0x4d0] sm:$0xff] }
  0xe1   : > { %466 = vxpose.xlu0.b32.cont [14/16] (narrow) %v242_v27, 16  ;;  %v342_v27 = vpop.trf.xlu0 }
  0xe4   : > { %496 = vxpose.xlu1.b32.cont [12/16] (narrow) %v256_v28, 16  ;;  %v301_v28 = vld [vmem:[%s1107_s30 + $0x440] sm:$0xff] }
  0xe5   : > { %467 = vxpose.xlu0.b32.cont [15/16] (narrow) %v243_v29, 16 }
  0xe8   : > { %497 = vxpose.xlu1.b32.cont [13/16] (narrow) %v257_v30, 16  ;;  %v320_v30 = vld [vmem:[%s1107_s30 + $0x4d8] sm:$0xff] }
  0xe9   : > { %468 = vxpose.xlu0.b32.end [16/16] (narrow) %v244_v31, 16 }
  0xec   : > { %498 = vxpose.xlu1.b32.cont [14/16] (narrow) %v258_v32, 16  ;;  %v302_v32 = vld [vmem:[%s1107_s30 + $0x448] sm:$0xff] }
  0xed   : > { %517 = vxpose.xlu0.b32.start [1/16] (narrow) %v261_v33, 16  ;;  %v405_v31 = vpop.trf.xlu0  ;;  %v321_v33 = vld [vmem:[%s1107_s30 + $0x4e0] sm:$0xff] }
  0xf0   : > { %499 = vxpose.xlu1.b32.cont [15/16] (narrow) %v259_v34, 16 }
  0xf1   : > { %518 = vxpose.xlu0.b32.cont [2/16] (narrow) %v262_v35, 16  ;;  %v303_v35 = vld [vmem:[%s1107_s30 + $0x450] sm:$0xff] }
  0xf4   : > { %500 = vxpose.xlu1.b32.end [16/16] (narrow) %v260_v36, 16  ;;  %v406_v36 = vpop.trf.xlu0 }
  0xf5   : > { %519 = vxpose.xlu0.b32.cont [3/16] (narrow) %v263_v37, 16  ;;  %v322_v37 = vld [vmem:[%s1107_s30 + $0x4e8] sm:$0xff] }
  0xf8   : > { %549 = vxpose.xlu1.b32.start [1/16] (narrow) %v277_v38, 16  ;;  %v437_v29 = vpop.trf.xlu1 }
  0xf9   : > { %520 = vxpose.xlu0.b32.cont [4/16] (narrow) %v264_v39, 16  ;;  %v304_v39 = vld [vmem:[%s1107_s30 + $0x458] sm:$0xff] }
  0xfc   : > { %550 = vxpose.xlu1.b32.cont [2/16] (narrow) %v278_v40, 16  ;;  %v438_v34 = vpop.trf.xlu1 }
  0xfd   : > { %521 = vxpose.xlu0.b32.cont [5/16] (narrow) %v265_v41, 16  ;;  %v323_v41 = vld [vmem:[%s1107_s30 + $0x4f0] sm:$0xff] }
 0x100   : > { %551 = vxpose.xlu1.b32.cont [3/16] (narrow) %v279_v42, 16  ;;  %v670_v42 = vmul.f32 %v1253_v18, %v438_v34 }
 0x101   : > { %522 = vxpose.xlu0.b32.cont [6/16] (narrow) %v266_v43, 16  ;;  %v305_v43 = vld [vmem:[%s1107_s30 + $0x460] sm:$0xff] }
 0x104   : > { %552 = vxpose.xlu1.b32.cont [4/16] (narrow) %v280_v44, 16 }
 0x105   : > { %523 = vxpose.xlu0.b32.cont [7/16] (narrow) %v267_v45, 16  ;;  %v324_v45 = vld [vmem:[%s1107_s30 + $0x4f8] sm:$0xff] }
 0x108   : > { %553 = vxpose.xlu1.b32.cont [5/16] (narrow) %v281_v46, 16  ;;  %v668_v46 = vmul.f32 %v1253_v18, %v374_v25 }
 0x109   : > { %524 = vxpose.xlu0.b32.cont [8/16] (narrow) %v268_v47, 16  ;;  %v669_v47 = vmul.f32 %v1253_v18, %v406_v36 }
 0x10c   : > { %554 = vxpose.xlu1.b32.cont [6/16] (narrow) %v282_v48, 16  ;;  %v667_v48 = vmul.f32 %v1253_v18, %v342_v27 }
 0x10d   : > { %525 = vxpose.xlu0.b32.cont [9/16] (narrow) %v269_v49, 16 }
 0x110   : > { %555 = vxpose.xlu1.b32.cont [7/16] (narrow) %v283_v50, 16  ;;  %v702_v50 = vsel %vm677_vm0, %v670_v42, 0.0 }
 0x111   : > { %526 = vxpose.xlu0.b32.cont [10/16] (narrow) %v270_v51, 16 }
 0x114   : > { %556 = vxpose.xlu1.b32.cont [8/16] (narrow) %v284_v52, 16  ;;  %v306_v52 = vld [vmem:[%s1107_s30 + $0x468] sm:$0xff] }
 0x115   : > { %527 = vxpose.xlu0.b32.cont [11/16] (narrow) %v271_v53, 16  ;;  %v660_v53 = vmul.f32 %v1250_v16, %v437_v29 }
 0x118   : > { %557 = vxpose.xlu1.b32.cont [9/16] (narrow) %v285_v54, 16  ;;  %v686_v54 = vsel %vm677_vm0, %v668_v46, 0.0 }
 0x119   : > { %528 = vxpose.xlu0.b32.cont [12/16] (narrow) %v272_v55, 16  ;;  %v694_v55 = vsel %vm677_vm0, %v669_v47, 0.0 }
 0x11c   : > { %558 = vxpose.xlu1.b32.cont [10/16] (narrow) %v286_v56, 16 }
 0x11d   : > { %529 = vxpose.xlu0.b32.cont [13/16] (narrow) %v273_v57, 16  ;;  %v678_v57 = vsel %vm677_vm0, %v667_v48, 0.0 }
 0x120   : > { %559 = vxpose.xlu1.b32.cont [11/16] (narrow) %v287_v58, 16  ;;  %v658_v58 = vmul.f32 %v1250_v16, %v373_v20 }
 0x121   : > { %530 = vxpose.xlu0.b32.cont [14/16] (narrow) %v274_v59, 16  ;;  %v659_v59 = vmul.f32 %v1250_v16, %v405_v31 }
 0x124   : > { %560 = vxpose.xlu1.b32.cont [12/16] (narrow) %v288_v60, 16  ;;  %v703_v60 = vadd.f32 %v702_v50, %v660_v53  ;;  %v1032_v50 = vmov 1966171168  }
 0x125   : > { %531 = vxpose.xlu0.b32.cont [15/16] (narrow) %v275_v61, 16  ;;  %v657_v61 = vmul.f32 %v1250_v16, %v341_v22 }
 0x128   : > { %561 = vxpose.xlu1.b32.cont [13/16] (narrow) %v289_v62, 16 }
 0x129   : > { %532 = vxpose.xlu0.b32.end [16/16] (narrow) %v276_v63, 16 }
 0x12c   : > { %562 = vxpose.xlu1.b32.cont [14/16] (narrow) %v290_v0, 16  ;;  %v307_v0 = vld [vmem:[%s1107_s30 + $0x470] sm:$0xff] }
 0x12d   : > { %613 = vxpose.xlu0.b32.start [1/16] (narrow) %v309_v1, 16  ;;  %v469_v40 = vpop.trf.xlu0  ;;  %v687_v1 = vadd.f32 %v686_v54, %v658_v58 }
 0x130   : > { %563 = vxpose.xlu1.b32.cont [15/16] (narrow) %v291_v2, 16  ;;  %v695_v2 = vadd.f32 %v694_v55, %v659_v59 }
 0x131   : > { %614 = vxpose.xlu0.b32.cont [2/16] (narrow) %v310_v3, 16  ;;  %v470_v49 = vpop.trf.xlu0 }
 0x132   : > { %v671_v56 = vmul.f32 %v1253_v18, %v470_v49 }
 0x134   : > { %564 = vxpose.xlu1.b32.end [16/16] (narrow) %v292_v4, 16  ;;  %v679_v4 = vadd.f32 %v678_v57, %v657_v61 }
 0x135   : > { %615 = vxpose.xlu0.b32.cont [3/16] (narrow) %v311_v5, 16  ;;  %v710_v5 = vsel %vm677_vm0, %v671_v56, 0.0 }
 0x138   : > { %581 = vxpose.xlu1.b32.start [1/16] (narrow) %v293_v6, 16  ;;  %v501_v38 = vpop.trf.xlu1  ;;  %v704_v6 = vrot.slane %v703_v60, 4 }
 0x139   : > { %616 = vxpose.xlu0.b32.cont [4/16] (narrow) %v312_v7, 16  ;;  %v662_v3 = vmul.f32 %v1250_v16, %v501_v38  ;;  %v661_v7 = vmul.f32 %v1250_v16, %v469_v40 }
 0x13c   : > { %582 = vxpose.xlu1.b32.cont [2/16] (narrow) %v294_v8, 16  ;;  %v502_v44 = vpop.trf.xlu1 }
 0x13d   : > { %617 = vxpose.xlu0.b32.cont [5/16] (narrow) %v313_v9, 16  ;;  %v672_v51 = vmul.f32 %v1253_v18, %v502_v44 }
 0x13f   : > { %v718_v62 = vsel %vm677_vm0, %v672_v51, 0.0  ;;  %v773_v51 = vunpack.c.l.s4 %v1032_v50 }
 0x140   : > { %583 = vxpose.xlu1.b32.cont [3/16] (narrow) %v295_v10, 16  ;;  %v719_v8 = vadd.f32 %v718_v62, %v662_v3  ;;  %v308_v10 = vld [vmem:[%s1107_s30 + $0x478] sm:$0xff] }
 0x141   : > { %618 = vxpose.xlu0.b32.cont [6/16] (narrow) %v314_v11, 16  ;;  %v688_v11 = vrot.slane %v687_v1, 4  ;;  %v774_v62 = vunpack.c.0.s8 %v773_v51 }
 0x142   : > { %v720_v20 = vrot.slane %v719_v8, 4 }
 0x144   : > { %584 = vxpose.xlu1.b32.cont [4/16] (narrow) %v296_v12, 16  ;;  %v696_v12 = vrot.slane %v695_v2, 4 }
 0x145   : > { %619 = vxpose.xlu0.b32.cont [7/16] (narrow) %v315_v13, 16  ;;  %v711_v13 = vadd.f32 %v710_v5, %v661_v7 }
 0x147   : > { %v712_v25 = vrot.slane %v711_v13, 4 }
 0x148   : > { %585 = vxpose.xlu1.b32.cont [5/16] (narrow) %v297_v14, 16 }
 0x149   : > { %620 = vxpose.xlu0.b32.cont [8/16] (narrow) %v316_v15, 16  ;;  %v680_v15 = vrot.slane %v679_v4, 4 }
 0x14c   : > { %586 = vxpose.xlu1.b32.cont [6/16] (narrow) %v298_v17, 16 }
 0x14d   : > { %621 = vxpose.xlu0.b32.cont [9/16] (narrow) %v317_v19, 16  ;;  %v705_v19 = vadd.f32 %v704_v6, %v703_v60 }
 0x14f   : > { %v706_v27 = vrot.slane %v705_v19, 2 }
 0x150   : > { %587 = vxpose.xlu1.b32.cont [7/16] (narrow) %v299_v21, 16 }
 0x151   : > { %622 = vxpose.xlu0.b32.cont [10/16] (narrow) %v318_v23, 16  ;;  %v689_v23 = vadd.f32 %v688_v11, %v687_v1 }
 0x153   : > { %v690_v31 = vrot.slane %v689_v23, 2 }
 0x154   : > { %588 = vxpose.xlu1.b32.cont [8/16] (narrow) %v300_v24, 16  ;;  %v697_v24 = vadd.f32 %v696_v12, %v695_v2 }
 0x155   : > { %623 = vxpose.xlu0.b32.cont [11/16] (narrow) %v319_v26, 16  ;;  %v681_v26 = vadd.f32 %v680_v15, %v679_v4  ;;  %v691_v40 = vadd.f32 %v690_v31, %v689_v23 }
 0x157   : > { %v682_v34 = vrot.slane %v681_v26, 2  ;;  %v692_v53 = vrot.slane %v691_v40, 1 }
 0x158   : > { %589 = vxpose.xlu1.b32.cont [9/16] (narrow) %v301_v28, 16  ;;  %v721_v28 = vadd.f32 %v720_v20, %v719_v8 }
 0x159   : > { %624 = vxpose.xlu0.b32.cont [12/16] (narrow) %v320_v30, 16  ;;  %v683_v44 = vadd.f32 %v682_v34, %v681_v26 }
 0x15a   : > { %v722_v36 = vrot.slane %v721_v28, 2 }
 0x15b   : > { %v684_v57 = vrot.slane %v683_v44, 1 }
 0x15c   : > { %590 = vxpose.xlu1.b32.cont [10/16] (narrow) %v302_v32, 16  ;;  %v698_v32 = vrot.slane %v697_v24, 2  ;;  %v723_v47 = vadd.f32 %v722_v36, %v721_v28 }
 0x15d   : > { %625 = vxpose.xlu0.b32.cont [13/16] (narrow) %v321_v33, 16  ;;  %v713_v33 = vadd.f32 %v712_v25, %v711_v13  ;;  %v685_v4 = vadd.f32 %v684_v57, %v683_v44 }
 0x15e   : > { %v724_v59 = vrot.slane %v723_v47, 1 }
 0x15f   : > { %v714_v42 = vrot.slane %v713_v33, 2 }
 0x160   : > { %591 = vxpose.xlu1.b32.cont [11/16] (narrow) %v303_v35, 16  ;;  %v707_v35 = vadd.f32 %v706_v27, %v705_v19  ;;  %v725_v6 = vadd.f32 %v724_v59, %v723_v47 }
 0x161   : > { %626 = vxpose.xlu0.b32.cont [14/16] (narrow) %v322_v37, 16  ;;  %v715_v55 = vadd.f32 %v714_v42, %v713_v33 }
 0x162   : > { %v708_v46 = vrot.slane %v707_v35, 1 }
 0x163   : > { %v716_v2 = vrot.slane %v715_v55, 1 }
 0x164   : > { %592 = vxpose.xlu1.b32.cont [12/16] (narrow) %v304_v39, 16  ;;  %v709_v58 = vadd.f32 %v708_v46, %v707_v35 }
 0x165   : > { %627 = vxpose.xlu0.b32.cont [15/16] (narrow) %v323_v41, 16  ;;  %v699_v41 = vadd.f32 %v698_v32, %v697_v24 }
 0x167   : > { %v700_v54 = vrot.slane %v699_v41, 1 }
 0x168   : > { %593 = vxpose.xlu1.b32.cont [13/16] (narrow) %v305_v43, 16 }
 0x169   : > { %628 = vxpose.xlu0.b32.end [16/16] (narrow) %v324_v45, 16  ;;  %v701_v1 = vadd.f32 %v700_v54, %v699_v41 }
 0x16b   : > { %v769_v5 = vcombine.low %v701_v1, %v709_v58 }
 0x16c   : > { %594 = vxpose.xlu1.b32.cont [14/16] (narrow) %v306_v52, 16  ;;  %v775_v52 = vlaneseq }
 0x16d   : > { %v533_v63 = vpop.trf.xlu0 }
 0x16e   : > { %v663_v17 = vmul.f32 %v1250_v16, %v533_v63  ;;  %v776_v63 = vshrl.u32 %v775_v52, 7  ;;  %vm837_vm1 = vcmp.lt.s32.totalorder %v775_v52, 256 }
 0x170   : > { %595 = vxpose.xlu1.b32.cont [15/16] (narrow) %v307_v0, 16  ;;  %v693_v0 = vadd.f32 %v692_v53, %v691_v40  ;;  %v777_v12 = vsub.s32 %v774_v62, %v776_v63 }
 0x171   : > { %v534_v9 = vpop.trf.xlu0 }
 0x172   : > { %v673_v14 = vmul.f32 %v1253_v18, %v534_v9  ;;  %v768_v9 = vcombine.low %v685_v4, %v693_v0 }
 0x174   : > { %v726_v21 = vsel %vm677_vm0, %v673_v14, 0.0  ;;  %596 = vxpose.xlu1.b32.end [16/16] (narrow) %v308_v10, 16  ;;  %v717_v10 = vadd.f32 %v716_v2, %v715_v55  ;;  %v778_v20 = vrot.slane %v768_v9, %v777_v12 }
 0x175   : > { %v727_v22 = vadd.f32 %v726_v21, %v663_v17  ;;  %v785_v17 = vrot.slane %v769_v5, %v777_v12 }
 0x176   : > { %v770_v13 = vcombine.low %v717_v10, %v725_v6 }
 0x177   : > { %v728_v29 = vrot.slane %v727_v22, 4  ;;  %v800_v23 = vcombine.low %v778_v20, %v785_v17 }
 0x178   : > { %v565_v30 = vpop.trf.xlu1  ;;  %v792_v21 = vrot.slane %v770_v13, %v777_v12 }
 0x179   : > { %v729_v37 = vadd.f32 %v728_v29, %v727_v22  ;;  %v664_v43 = vmul.f32 %v1250_v16, %v565_v30  ;;  %v808_v25 = vrot.slane %v800_v23, %v777_v12 }
 0x17b   : > { %v730_v48 = vrot.slane %v729_v37, 2 }
 0x17c   : > { %v566_v38 = vpop.trf.xlu1 }
 0x17d   : > { %v674_v39 = vmul.f32 %v1253_v18, %v566_v38  ;;  %v731_v60 = vadd.f32 %v730_v48, %v729_v37 }
 0x17f   : > { %v734_v45 = vsel %vm677_vm0, %v674_v39, 0.0  ;;  %v732_v7 = vrot.slane %v731_v60, 1 }
 0x180   : > { %v735_v49 = vadd.f32 %v734_v45, %v664_v43 }
 0x181   : > { %v733_v14 = vadd.f32 %v732_v7, %v731_v60 }
 0x182   : > { %v736_v56 = vrot.slane %v735_v49, 4 }
 0x184   : > { %v737_v61 = vadd.f32 %v736_v56, %v735_v49 }
 0x186   : > { %v738_v3 = vrot.slane %v737_v61, 2 }
 0x188   : > { %v739_v8 = vadd.f32 %v738_v3, %v737_v61 }
 0x18a   : > { %v740_v11 = vrot.slane %v739_v8, 1 }
 0x18c   : > { %v741_v15 = vadd.f32 %v740_v11, %v739_v8 }
 0x18e   : > { %v771_v19 = vcombine.low %v733_v14, %v741_v15 }
 0x190   : > { %v799_v22 = vrot.slane %v771_v19, %v777_v12 }
 0x192   : > { %v801_v24 = vcombine.low %v792_v21, %v799_v22 }
 0x194   : > { %v815_v26 = vrot.slane %v801_v24, %v777_v12 }
 0x196   : > { %v816_v27 = vcombine.low %v808_v25, %v815_v26 }
 0x198   : > { %834 = vst [vmem:[%s1301_s5] sm:$0xff] %v816_v27 }
 0x1ad   : > { %v629_v28 = vpop.trf.xlu0 }
 0x1ae   : > { %v666_v31 = vmul.f32 %v1250_v16, %v629_v28 }
 0x1b1   : > { %v630_v29 = vpop.trf.xlu0 }
 0x1b2   : > { %v676_v30 = vmul.f32 %v1253_v18, %v630_v29 }
 0x1b4   : > { %v750_v32 = vsel %vm677_vm0, %v676_v30, 0.0 }
 0x1b5   : > { %v751_v33 = vadd.f32 %v750_v32, %v666_v31 }
 0x1b7   : > { %v752_v34 = vrot.slane %v751_v33, 4 }
 0x1b8   : > { %v597_v35 = vpop.trf.xlu1 }
 0x1b9   : > { %v753_v36 = vadd.f32 %v752_v34, %v751_v33  ;;  %v665_v39 = vmul.f32 %v1250_v16, %v597_v35 }
 0x1bb   : > { %v754_v41 = vrot.slane %v753_v36, 2 }
 0x1bc   : > { %v598_v37 = vpop.trf.xlu1 }
 0x1bd   : > { %v675_v38 = vmul.f32 %v1253_v18, %v598_v37  ;;  %v755_v44 = vadd.f32 %v754_v41, %v753_v36 }
 0x1bf   : > { %v742_v40 = vsel %vm677_vm0, %v675_v38, 0.0  ;;  %v756_v47 = vrot.slane %v755_v44, 1 }
 0x1c0   : > { %v743_v42 = vadd.f32 %v742_v40, %v665_v39 }
 0x1c1   : > { %v757_v50 = vadd.f32 %v756_v47, %v755_v44 }
 0x1c2   : > { %v744_v43 = vrot.slane %v743_v42, 4 }
 0x1c4   : > { %v745_v45 = vadd.f32 %v744_v43, %v743_v42 }
 0x1c6   : > { %v746_v46 = vrot.slane %v745_v45, 2 }
 0x1c8   : > { %v747_v48 = vadd.f32 %v746_v46, %v745_v45 }
 0x1ca   : > { %v748_v49 = vrot.slane %v747_v48, 1 }
 0x1cc   : > { %v749_v51 = vadd.f32 %v748_v49, %v747_v48 }
 0x1ce   : > { %v817_v18 = vcombine.low %v749_v51, %v757_v50 }
 0x1d0   : > { %v824_v16 = vrot.slane %v817_v18, %v777_v12 }
 0x1d2   : > { %v831_v53 = vrot.slane %v824_v16, %v777_v12 }
 0x1d4   : > { %839 = vst.msk [vmem:[%s1301_s5 + $0x8] sm:$0x3] %vm837_vm1, %v831_v53 }
 0x1d5   : > { %980 = shalt.err (!%p977_p3)
}
 0x1d6   : > { %s981_s23 = scalar_lea.hbm %s1316_s13, 160  ;;  %s985_s26 = scalar_lea.hbm %s1363_s2, 320 }
 0x1d7   : > { %p982_p4 = scmp.ne.s32.totalorder %s1316_s13, %s981_s23  ;;  %p986_p9 = scmp.lt.u32.totalorder %s1316_s13, %s1363_s2 }
 0x1d8   : > { %p987_p10 = scmp.lt.u32.totalorder %s985_s26, %s981_s23  ;;  %p989_p12 = scmp.lt.u32.totalorder %s981_s23, %s1316_s13 }
 0x1d9   : > { %p983_p7 = pnand %p982_p4, %p1084_p5 }
 0x1da   : > { %p988_p11 = por %p987_p10, %p986_p9 }
 0x1db   : > { %p984_p8 = pneg %p983_p7 }
 0x1dc   : > { %p990_p13 = por %p989_p12, %p988_p11 }
 0x1de   : > { %p991_p0 = pnand %p990_p13, %p984_p8 }
 0x1e0   : > { %994 = shalt.err (!%p991_p0)
}
 0x1e1   : > { %924 = dma.vmem_to_hbm [thread:$0]  (%p1084_p5), %s1318_s6, 160, %s1316_s13, %s841_s14  }
 0x1e2 PF: > { %p930_p1 = scmp.ge.s32.totalorder %s1029_s12, 2  ;;  %s867_s29 = sand.u32 1, %s1017_s9  }
 0x1e3   : > { %s868_s30 = scalar_lea.sflag [#allocation3], %s867_s29 }
 0x1e4   : > { %p927_p2 = pnand %p930_p1, %p1088_p6 }
 0x1e6   : > { %1012 = dma.done.wait (!%p927_p2), %s868_s30, 160  }
 0x1e7   : > { %1014 = vsyncadd (!%p927_p2), %s868_s30, 4294967136  ;;  %p12_p3 = scmp.ge.s32.totalorder %s1072_s15, 4   ;;  %s1366_s9 = smov %s1021_s10 }
 0x1e8   : > { %s1367_s10 = smov %s1025_s11  ;;  %s1368_s11 = smov %s1082_s18 }
 0x1e9   : > { %s1369_s12 = smov %s1072_s15  ;;  %14 = sbr.rel (!%p12_p3) target bundleno = 3 (0x3), region = 63 }
 0x1f0   :  { %873 = vsyncpa [#allocation3], 1 }
 0x1f1   :  { %875 = vsyncpa [#allocation3 + $0x1], 1 }

</bundles_post_ra>
